<compile_context>
chip_gen: v6e
topology: v6e:2x2x1
jax: 0.10.0
libtpu: 0.0.40
codegen_flags: <defaults>
</compile_context>

<pallas_src>
import jax
import jax.numpy as jnp
from jax.experimental import pallas as pl
from jax.experimental.pallas import tpu as pltpu

HIDDEN = 5
NUM_IN = 4
NUM_OU = 1

LANES = 128
SUB_TILE = 16                     # sublane rows per grid step
TILE_B = SUB_TILE * LANES         # 2048 batch elements per grid step

# Offsets of each parameter inside the packed 1-D SMEM slab (PyTorch (out,in) layout).
W1_OFF = 0
B1_OFF = W1_OFF + HIDDEN * NUM_IN
W2_OFF = B1_OFF + HIDDEN
B2_OFF = W2_OFF + HIDDEN * HIDDEN
B3W_OFF = B2_OFF + HIDDEN          # start of w3
B3_OFF = B3W_OFF + NUM_OU * HIDDEN
N_PARAM = B3_OFF + NUM_OU          # 61 floats total


def mlp_kernel(p_ref, x_ref, o_ref):
    # p_ref: (N_PARAM,) f32 in SMEM
    # x_ref: (NUM_IN, SUB_TILE, 128) f32 in VMEM
    # o_ref: (NUM_OU, SUB_TILE, 128) f32 in VMEM
    x_rows = [x_ref[k] for k in range(NUM_IN)]        # each (SUB_TILE, 128)

    def dense_tanh(rows_in, w_off, b_off, n_out):
        # rows_out[j] = tanh(sum_k W[j,k] * rows_in[k] + b[j])  -- pure VPU/EUP.
        n_in = len(rows_in)
        rows_out = []
        for j in range(n_out):
            acc = rows_in[0] * p_ref[w_off + j * n_in]
            for k in range(1, n_in):
                acc = acc + rows_in[k] * p_ref[w_off + j * n_in + k]
            rows_out.append(jnp.tanh(acc + p_ref[b_off + j]))
        return rows_out

    h1 = dense_tanh(x_rows, W1_OFF, B1_OFF, HIDDEN)    # 5 x (SUB_TILE, 128)
    h2 = dense_tanh(h1, W2_OFF, B2_OFF, HIDDEN)        # 5 x (SUB_TILE, 128)
    y = dense_tanh(h2, B3W_OFF, B3_OFF, NUM_OU)        # 1 x (SUB_TILE, 128)
    for j in range(NUM_OU):
        o_ref[j] = y[j]                                # full, unmasked lane-dense store


def pack_params(params):
    w1, b1, w2, b2, w3, b3 = params    # weights (out, in), biases (out,)
    slab = jnp.concatenate([w1.ravel(), b1.ravel(), w2.ravel(),
                            b2.ravel(), w3.ravel(), b3.ravel()])
    return slab.astype(jnp.float32)


@jax.jit
def neural_network_forward(x, params):
    """x: (B, NUM_IN) f32 -> (B, NUM_OU) f32 (same semantics as the PyTorch forward)."""
    slab = pack_params(params)
    B = x.shape[0]
    n_blocks = max(1, pl.cdiv(B, TILE_B))
    b_pad = n_blocks * TILE_B

    # Batch onto the minor (sublane, lane) axes -> lane-dense compute & stores.
    xt = jnp.zeros((NUM_IN, b_pad), jnp.float32).at[:, :B].set(
        x.T.astype(jnp.float32))
    x3 = xt.reshape(NUM_IN, n_blocks * SUB_TILE, LANES)

    out3 = pl.pallas_call(
        mlp_kernel,
        out_shape=jax.ShapeDtypeStruct(
            (NUM_OU, n_blocks * SUB_TILE, LANES), jnp.float32),
        grid=(n_blocks,),
        in_specs=[
            pl.BlockSpec(memory_space=pltpu.MemorySpace.SMEM),          # param slab
            pl.BlockSpec((NUM_IN, SUB_TILE, LANES), lambda i: (0, i, 0)),
        ],
        out_specs=pl.BlockSpec((NUM_OU, SUB_TILE, LANES), lambda i: (0, i, 0)),
        compiler_params=pltpu.CompilerParams(
            dimension_semantics=("parallel",)),
    )(slab, x3)

    return out3.reshape(NUM_OU, b_pad)[:, :B].T        # (B, NUM_OU)


def xavier_uniform(key, fan_out, fan_in):
    # matches torch.nn.init.xavier_uniform_ (gain=1.0); PyTorch (out, in) layout
    bound = (6.0 / (fan_in + fan_out)) ** 0.5
    return jax.random.uniform(key, (fan_out, fan_in), jnp.float32, -bound, bound)


def linear_bias(key, fan_in, fan_out):
    # torch nn.Linear default bias init: U(-1/sqrt(fan_in), 1/sqrt(fan_in))
    bound = 1.0 / (fan_in ** 0.5)
    return jax.random.uniform(key, (fan_out,), jnp.float32, -bound, bound)


def init_params(key):
    k = jax.random.split(key, 6)
    w1 = xavier_uniform(k[0], HIDDEN, NUM_IN)
    b1 = linear_bias(k[1], NUM_IN, HIDDEN)
    w2 = xavier_uniform(k[2], HIDDEN, HIDDEN)
    b2 = linear_bias(k[3], HIDDEN, HIDDEN)
    w3 = xavier_uniform(k[4], NUM_OU, HIDDEN)
    b3 = linear_bias(k[5], HIDDEN, NUM_OU)
    return w1, b1, w2, b2, w3, b3


if __name__ == "__main__":
    key = jax.random.PRNGKey(0)
    pkey, xkey = jax.random.split(key)
    params = init_params(pkey)

    batch = 8
    x = jax.random.normal(xkey, (batch, NUM_IN), jnp.float32)

    out = neural_network_forward(x, params)
    out = jax.block_until_ready(out)

    # pure-JAX reference (PyTorch layout: y = x @ W.T + b)
    w1, b1, w2, b2, w3, b3 = params
    ref = jnp.tanh(jnp.tanh(jnp.tanh(x @ w1.T + b1) @ w2.T + b2) @ w3.T + b3)
    assert out.shape == (batch, NUM_OU)
    assert jnp.allclose(out, ref, atol=1e-5), "mismatch vs reference"

    print("KERNEL_OK")
</pallas_src>

<mosaic_0001>
module attributes {stable_mosaic.version = 11 : i64} {
  func.func @mlp_kernel(%arg0: i32, %arg1: memref<61xf32, #tpu.memory_space<smem>>, %arg2: memref<4x16x128xf32, #tpu.memory_space<vmem>>, %arg3: memref<1x16x128xf32, #tpu.memory_space<vmem>>) attributes {dimension_semantics = [#tpu.dimension_semantics<parallel>], iteration_bounds = array<i64: 1>, scalar_prefetch = 0 : i64, scratch_operands = 0 : i64, tpu.core_type = #tpu.core_type<tc>, window_params = [{transform_indices = @transform_0, window_bounds = array<i64: 61>}, {transform_indices = @transform_1, window_bounds = array<i64: 4, 16, 128>}, {transform_indices = @transform_2, window_bounds = array<i64: 1, 16, 128>}]} {
    %c0 = arith.constant 0 : index
    %c0_0 = arith.constant 0 : index
    %c0_1 = arith.constant 0 : index
    %0 = vector.load %arg2[%c0, %c0_0, %c0_1] : memref<4x16x128xf32, #tpu.memory_space<vmem>>, vector<1x16x128xf32>
    %1 = vector.shape_cast %0 : vector<1x16x128xf32> to vector<16x128xf32>
    %c1 = arith.constant 1 : index
    %c0_2 = arith.constant 0 : index
    %c0_3 = arith.constant 0 : index
    %2 = vector.load %arg2[%c1, %c0_2, %c0_3] : memref<4x16x128xf32, #tpu.memory_space<vmem>>, vector<1x16x128xf32>
    %3 = vector.shape_cast %2 : vector<1x16x128xf32> to vector<16x128xf32>
    %c2 = arith.constant 2 : index
    %c0_4 = arith.constant 0 : index
    %c0_5 = arith.constant 0 : index
    %4 = vector.load %arg2[%c2, %c0_4, %c0_5] : memref<4x16x128xf32, #tpu.memory_space<vmem>>, vector<1x16x128xf32>
    %5 = vector.shape_cast %4 : vector<1x16x128xf32> to vector<16x128xf32>
    %c3 = arith.constant 3 : index
    %c0_6 = arith.constant 0 : index
    %c0_7 = arith.constant 0 : index
    %6 = vector.load %arg2[%c3, %c0_6, %c0_7] : memref<4x16x128xf32, #tpu.memory_space<vmem>>, vector<1x16x128xf32>
    %7 = vector.shape_cast %6 : vector<1x16x128xf32> to vector<16x128xf32>
    %c0_8 = arith.constant 0 : index
    %8 = memref.load %arg1[%c0_8] : memref<61xf32, #tpu.memory_space<smem>>
    %9 = vector.broadcast %8 : f32 to vector<16x128xf32>
    %10 = arith.mulf %1, %9 : vector<16x128xf32>
    %c1_9 = arith.constant 1 : index
    %11 = memref.load %arg1[%c1_9] : memref<61xf32, #tpu.memory_space<smem>>
    %12 = vector.broadcast %11 : f32 to vector<16x128xf32>
    %13 = arith.mulf %3, %12 : vector<16x128xf32>
    %14 = arith.addf %10, %13 : vector<16x128xf32>
    %c2_10 = arith.constant 2 : index
    %15 = memref.load %arg1[%c2_10] : memref<61xf32, #tpu.memory_space<smem>>
    %16 = vector.broadcast %15 : f32 to vector<16x128xf32>
    %17 = arith.mulf %5, %16 : vector<16x128xf32>
    %18 = arith.addf %14, %17 : vector<16x128xf32>
    %c3_11 = arith.constant 3 : index
    %19 = memref.load %arg1[%c3_11] : memref<61xf32, #tpu.memory_space<smem>>
    %20 = vector.broadcast %19 : f32 to vector<16x128xf32>
    %21 = arith.mulf %7, %20 : vector<16x128xf32>
    %22 = arith.addf %18, %21 : vector<16x128xf32>
    %c20 = arith.constant 20 : index
    %23 = memref.load %arg1[%c20] : memref<61xf32, #tpu.memory_space<smem>>
    %24 = vector.broadcast %23 : f32 to vector<16x128xf32>
    %25 = arith.addf %22, %24 : vector<16x128xf32>
    %26 = math.tanh %25 : vector<16x128xf32>
    %c4 = arith.constant 4 : index
    %27 = memref.load %arg1[%c4] : memref<61xf32, #tpu.memory_space<smem>>
    %28 = vector.broadcast %27 : f32 to vector<16x128xf32>
    %29 = arith.mulf %1, %28 : vector<16x128xf32>
    %c5 = arith.constant 5 : index
    %30 = memref.load %arg1[%c5] : memref<61xf32, #tpu.memory_space<smem>>
    %31 = vector.broadcast %30 : f32 to vector<16x128xf32>
    %32 = arith.mulf %3, %31 : vector<16x128xf32>
    %33 = arith.addf %29, %32 : vector<16x128xf32>
    %c6 = arith.constant 6 : index
    %34 = memref.load %arg1[%c6] : memref<61xf32, #tpu.memory_space<smem>>
    %35 = vector.broadcast %34 : f32 to vector<16x128xf32>
    %36 = arith.mulf %5, %35 : vector<16x128xf32>
    %37 = arith.addf %33, %36 : vector<16x128xf32>
    %c7 = arith.constant 7 : index
    %38 = memref.load %arg1[%c7] : memref<61xf32, #tpu.memory_space<smem>>
    %39 = vector.broadcast %38 : f32 to vector<16x128xf32>
    %40 = arith.mulf %7, %39 : vector<16x128xf32>
    %41 = arith.addf %37, %40 : vector<16x128xf32>
    %c21 = arith.constant 21 : index
    %42 = memref.load %arg1[%c21] : memref<61xf32, #tpu.memory_space<smem>>
    %43 = vector.broadcast %42 : f32 to vector<16x128xf32>
    %44 = arith.addf %41, %43 : vector<16x128xf32>
    %45 = math.tanh %44 : vector<16x128xf32>
    %c8 = arith.constant 8 : index
    %46 = memref.load %arg1[%c8] : memref<61xf32, #tpu.memory_space<smem>>
    %47 = vector.broadcast %46 : f32 to vector<16x128xf32>
    %48 = arith.mulf %1, %47 : vector<16x128xf32>
    %c9 = arith.constant 9 : index
    %49 = memref.load %arg1[%c9] : memref<61xf32, #tpu.memory_space<smem>>
    %50 = vector.broadcast %49 : f32 to vector<16x128xf32>
    %51 = arith.mulf %3, %50 : vector<16x128xf32>
    %52 = arith.addf %48, %51 : vector<16x128xf32>
    %c10 = arith.constant 10 : index
    %53 = memref.load %arg1[%c10] : memref<61xf32, #tpu.memory_space<smem>>
    %54 = vector.broadcast %53 : f32 to vector<16x128xf32>
    %55 = arith.mulf %5, %54 : vector<16x128xf32>
    %56 = arith.addf %52, %55 : vector<16x128xf32>
    %c11 = arith.constant 11 : index
    %57 = memref.load %arg1[%c11] : memref<61xf32, #tpu.memory_space<smem>>
    %58 = vector.broadcast %57 : f32 to vector<16x128xf32>
    %59 = arith.mulf %7, %58 : vector<16x128xf32>
    %60 = arith.addf %56, %59 : vector<16x128xf32>
    %c22 = arith.constant 22 : index
    %61 = memref.load %arg1[%c22] : memref<61xf32, #tpu.memory_space<smem>>
    %62 = vector.broadcast %61 : f32 to vector<16x128xf32>
    %63 = arith.addf %60, %62 : vector<16x128xf32>
    %64 = math.tanh %63 : vector<16x128xf32>
    %c12 = arith.constant 12 : index
    %65 = memref.load %arg1[%c12] : memref<61xf32, #tpu.memory_space<smem>>
    %66 = vector.broadcast %65 : f32 to vector<16x128xf32>
    %67 = arith.mulf %1, %66 : vector<16x128xf32>
    %c13 = arith.constant 13 : index
    %68 = memref.load %arg1[%c13] : memref<61xf32, #tpu.memory_space<smem>>
    %69 = vector.broadcast %68 : f32 to vector<16x128xf32>
    %70 = arith.mulf %3, %69 : vector<16x128xf32>
    %71 = arith.addf %67, %70 : vector<16x128xf32>
    %c14 = arith.constant 14 : index
    %72 = memref.load %arg1[%c14] : memref<61xf32, #tpu.memory_space<smem>>
    %73 = vector.broadcast %72 : f32 to vector<16x128xf32>
    %74 = arith.mulf %5, %73 : vector<16x128xf32>
    %75 = arith.addf %71, %74 : vector<16x128xf32>
    %c15 = arith.constant 15 : index
    %76 = memref.load %arg1[%c15] : memref<61xf32, #tpu.memory_space<smem>>
    %77 = vector.broadcast %76 : f32 to vector<16x128xf32>
    %78 = arith.mulf %7, %77 : vector<16x128xf32>
    %79 = arith.addf %75, %78 : vector<16x128xf32>
    %c23 = arith.constant 23 : index
    %80 = memref.load %arg1[%c23] : memref<61xf32, #tpu.memory_space<smem>>
    %81 = vector.broadcast %80 : f32 to vector<16x128xf32>
    %82 = arith.addf %79, %81 : vector<16x128xf32>
    %83 = math.tanh %82 : vector<16x128xf32>
    %c16 = arith.constant 16 : index
    %84 = memref.load %arg1[%c16] : memref<61xf32, #tpu.memory_space<smem>>
    %85 = vector.broadcast %84 : f32 to vector<16x128xf32>
    %86 = arith.mulf %1, %85 : vector<16x128xf32>
    %c17 = arith.constant 17 : index
    %87 = memref.load %arg1[%c17] : memref<61xf32, #tpu.memory_space<smem>>
    %88 = vector.broadcast %87 : f32 to vector<16x128xf32>
    %89 = arith.mulf %3, %88 : vector<16x128xf32>
    %90 = arith.addf %86, %89 : vector<16x128xf32>
    %c18 = arith.constant 18 : index
    %91 = memref.load %arg1[%c18] : memref<61xf32, #tpu.memory_space<smem>>
    %92 = vector.broadcast %91 : f32 to vector<16x128xf32>
    %93 = arith.mulf %5, %92 : vector<16x128xf32>
    %94 = arith.addf %90, %93 : vector<16x128xf32>
    %c19 = arith.constant 19 : index
    %95 = memref.load %arg1[%c19] : memref<61xf32, #tpu.memory_space<smem>>
    %96 = vector.broadcast %95 : f32 to vector<16x128xf32>
    %97 = arith.mulf %7, %96 : vector<16x128xf32>
    %98 = arith.addf %94, %97 : vector<16x128xf32>
    %c24 = arith.constant 24 : index
    %99 = memref.load %arg1[%c24] : memref<61xf32, #tpu.memory_space<smem>>
    %100 = vector.broadcast %99 : f32 to vector<16x128xf32>
    %101 = arith.addf %98, %100 : vector<16x128xf32>
    %102 = math.tanh %101 : vector<16x128xf32>
    %c25 = arith.constant 25 : index
    %103 = memref.load %arg1[%c25] : memref<61xf32, #tpu.memory_space<smem>>
    %104 = vector.broadcast %103 : f32 to vector<16x128xf32>
    %105 = arith.mulf %26, %104 : vector<16x128xf32>
    %c26 = arith.constant 26 : index
    %106 = memref.load %arg1[%c26] : memref<61xf32, #tpu.memory_space<smem>>
    %107 = vector.broadcast %106 : f32 to vector<16x128xf32>
    %108 = arith.mulf %45, %107 : vector<16x128xf32>
    %109 = arith.addf %105, %108 : vector<16x128xf32>
    %c27 = arith.constant 27 : index
    %110 = memref.load %arg1[%c27] : memref<61xf32, #tpu.memory_space<smem>>
    %111 = vector.broadcast %110 : f32 to vector<16x128xf32>
    %112 = arith.mulf %64, %111 : vector<16x128xf32>
    %113 = arith.addf %109, %112 : vector<16x128xf32>
    %c28 = arith.constant 28 : index
    %114 = memref.load %arg1[%c28] : memref<61xf32, #tpu.memory_space<smem>>
    %115 = vector.broadcast %114 : f32 to vector<16x128xf32>
    %116 = arith.mulf %83, %115 : vector<16x128xf32>
    %117 = arith.addf %113, %116 : vector<16x128xf32>
    %c29 = arith.constant 29 : index
    %118 = memref.load %arg1[%c29] : memref<61xf32, #tpu.memory_space<smem>>
    %119 = vector.broadcast %118 : f32 to vector<16x128xf32>
    %120 = arith.mulf %102, %119 : vector<16x128xf32>
    %121 = arith.addf %117, %120 : vector<16x128xf32>
    %c50 = arith.constant 50 : index
    %122 = memref.load %arg1[%c50] : memref<61xf32, #tpu.memory_space<smem>>
    %123 = vector.broadcast %122 : f32 to vector<16x128xf32>
    %124 = arith.addf %121, %123 : vector<16x128xf32>
    %125 = math.tanh %124 : vector<16x128xf32>
    %c30 = arith.constant 30 : index
    %126 = memref.load %arg1[%c30] : memref<61xf32, #tpu.memory_space<smem>>
    %127 = vector.broadcast %126 : f32 to vector<16x128xf32>
    %128 = arith.mulf %26, %127 : vector<16x128xf32>
    %c31 = arith.constant 31 : index
    %129 = memref.load %arg1[%c31] : memref<61xf32, #tpu.memory_space<smem>>
    %130 = vector.broadcast %129 : f32 to vector<16x128xf32>
    %131 = arith.mulf %45, %130 : vector<16x128xf32>
    %132 = arith.addf %128, %131 : vector<16x128xf32>
    %c32 = arith.constant 32 : index
    %133 = memref.load %arg1[%c32] : memref<61xf32, #tpu.memory_space<smem>>
    %134 = vector.broadcast %133 : f32 to vector<16x128xf32>
    %135 = arith.mulf %64, %134 : vector<16x128xf32>
    %136 = arith.addf %132, %135 : vector<16x128xf32>
    %c33 = arith.constant 33 : index
    %137 = memref.load %arg1[%c33] : memref<61xf32, #tpu.memory_space<smem>>
    %138 = vector.broadcast %137 : f32 to vector<16x128xf32>
    %139 = arith.mulf %83, %138 : vector<16x128xf32>
    %140 = arith.addf %136, %139 : vector<16x128xf32>
    %c34 = arith.constant 34 : index
    %141 = memref.load %arg1[%c34] : memref<61xf32, #tpu.memory_space<smem>>
    %142 = vector.broadcast %141 : f32 to vector<16x128xf32>
    %143 = arith.mulf %102, %142 : vector<16x128xf32>
    %144 = arith.addf %140, %143 : vector<16x128xf32>
    %c51 = arith.constant 51 : index
    %145 = memref.load %arg1[%c51] : memref<61xf32, #tpu.memory_space<smem>>
    %146 = vector.broadcast %145 : f32 to vector<16x128xf32>
    %147 = arith.addf %144, %146 : vector<16x128xf32>
    %148 = math.tanh %147 : vector<16x128xf32>
    %c35 = arith.constant 35 : index
    %149 = memref.load %arg1[%c35] : memref<61xf32, #tpu.memory_space<smem>>
    %150 = vector.broadcast %149 : f32 to vector<16x128xf32>
    %151 = arith.mulf %26, %150 : vector<16x128xf32>
    %c36 = arith.constant 36 : index
    %152 = memref.load %arg1[%c36] : memref<61xf32, #tpu.memory_space<smem>>
    %153 = vector.broadcast %152 : f32 to vector<16x128xf32>
    %154 = arith.mulf %45, %153 : vector<16x128xf32>
    %155 = arith.addf %151, %154 : vector<16x128xf32>
    %c37 = arith.constant 37 : index
    %156 = memref.load %arg1[%c37] : memref<61xf32, #tpu.memory_space<smem>>
    %157 = vector.broadcast %156 : f32 to vector<16x128xf32>
    %158 = arith.mulf %64, %157 : vector<16x128xf32>
    %159 = arith.addf %155, %158 : vector<16x128xf32>
    %c38 = arith.constant 38 : index
    %160 = memref.load %arg1[%c38] : memref<61xf32, #tpu.memory_space<smem>>
    %161 = vector.broadcast %160 : f32 to vector<16x128xf32>
    %162 = arith.mulf %83, %161 : vector<16x128xf32>
    %163 = arith.addf %159, %162 : vector<16x128xf32>
    %c39 = arith.constant 39 : index
    %164 = memref.load %arg1[%c39] : memref<61xf32, #tpu.memory_space<smem>>
    %165 = vector.broadcast %164 : f32 to vector<16x128xf32>
    %166 = arith.mulf %102, %165 : vector<16x128xf32>
    %167 = arith.addf %163, %166 : vector<16x128xf32>
    %c52 = arith.constant 52 : index
    %168 = memref.load %arg1[%c52] : memref<61xf32, #tpu.memory_space<smem>>
    %169 = vector.broadcast %168 : f32 to vector<16x128xf32>
    %170 = arith.addf %167, %169 : vector<16x128xf32>
    %171 = math.tanh %170 : vector<16x128xf32>
    %c40 = arith.constant 40 : index
    %172 = memref.load %arg1[%c40] : memref<61xf32, #tpu.memory_space<smem>>
    %173 = vector.broadcast %172 : f32 to vector<16x128xf32>
    %174 = arith.mulf %26, %173 : vector<16x128xf32>
    %c41 = arith.constant 41 : index
    %175 = memref.load %arg1[%c41] : memref<61xf32, #tpu.memory_space<smem>>
    %176 = vector.broadcast %175 : f32 to vector<16x128xf32>
    %177 = arith.mulf %45, %176 : vector<16x128xf32>
    %178 = arith.addf %174, %177 : vector<16x128xf32>
    %c42 = arith.constant 42 : index
    %179 = memref.load %arg1[%c42] : memref<61xf32, #tpu.memory_space<smem>>
    %180 = vector.broadcast %179 : f32 to vector<16x128xf32>
    %181 = arith.mulf %64, %180 : vector<16x128xf32>
    %182 = arith.addf %178, %181 : vector<16x128xf32>
    %c43 = arith.constant 43 : index
    %183 = memref.load %arg1[%c43] : memref<61xf32, #tpu.memory_space<smem>>
    %184 = vector.broadcast %183 : f32 to vector<16x128xf32>
    %185 = arith.mulf %83, %184 : vector<16x128xf32>
    %186 = arith.addf %182, %185 : vector<16x128xf32>
    %c44 = arith.constant 44 : index
    %187 = memref.load %arg1[%c44] : memref<61xf32, #tpu.memory_space<smem>>
    %188 = vector.broadcast %187 : f32 to vector<16x128xf32>
    %189 = arith.mulf %102, %188 : vector<16x128xf32>
    %190 = arith.addf %186, %189 : vector<16x128xf32>
    %c53 = arith.constant 53 : index
    %191 = memref.load %arg1[%c53] : memref<61xf32, #tpu.memory_space<smem>>
    %192 = vector.broadcast %191 : f32 to vector<16x128xf32>
    %193 = arith.addf %190, %192 : vector<16x128xf32>
    %194 = math.tanh %193 : vector<16x128xf32>
    %c45 = arith.constant 45 : index
    %195 = memref.load %arg1[%c45] : memref<61xf32, #tpu.memory_space<smem>>
    %196 = vector.broadcast %195 : f32 to vector<16x128xf32>
    %197 = arith.mulf %26, %196 : vector<16x128xf32>
    %c46 = arith.constant 46 : index
    %198 = memref.load %arg1[%c46] : memref<61xf32, #tpu.memory_space<smem>>
    %199 = vector.broadcast %198 : f32 to vector<16x128xf32>
    %200 = arith.mulf %45, %199 : vector<16x128xf32>
    %201 = arith.addf %197, %200 : vector<16x128xf32>
    %c47 = arith.constant 47 : index
    %202 = memref.load %arg1[%c47] : memref<61xf32, #tpu.memory_space<smem>>
    %203 = vector.broadcast %202 : f32 to vector<16x128xf32>
    %204 = arith.mulf %64, %203 : vector<16x128xf32>
    %205 = arith.addf %201, %204 : vector<16x128xf32>
    %c48 = arith.constant 48 : index
    %206 = memref.load %arg1[%c48] : memref<61xf32, #tpu.memory_space<smem>>
    %207 = vector.broadcast %206 : f32 to vector<16x128xf32>
    %208 = arith.mulf %83, %207 : vector<16x128xf32>
    %209 = arith.addf %205, %208 : vector<16x128xf32>
    %c49 = arith.constant 49 : index
    %210 = memref.load %arg1[%c49] : memref<61xf32, #tpu.memory_space<smem>>
    %211 = vector.broadcast %210 : f32 to vector<16x128xf32>
    %212 = arith.mulf %102, %211 : vector<16x128xf32>
    %213 = arith.addf %209, %212 : vector<16x128xf32>
    %c54 = arith.constant 54 : index
    %214 = memref.load %arg1[%c54] : memref<61xf32, #tpu.memory_space<smem>>
    %215 = vector.broadcast %214 : f32 to vector<16x128xf32>
    %216 = arith.addf %213, %215 : vector<16x128xf32>
    %217 = math.tanh %216 : vector<16x128xf32>
    %c55 = arith.constant 55 : index
    %218 = memref.load %arg1[%c55] : memref<61xf32, #tpu.memory_space<smem>>
    %219 = vector.broadcast %218 : f32 to vector<16x128xf32>
    %220 = arith.mulf %125, %219 : vector<16x128xf32>
    %c56 = arith.constant 56 : index
    %221 = memref.load %arg1[%c56] : memref<61xf32, #tpu.memory_space<smem>>
    %222 = vector.broadcast %221 : f32 to vector<16x128xf32>
    %223 = arith.mulf %148, %222 : vector<16x128xf32>
    %224 = arith.addf %220, %223 : vector<16x128xf32>
    %c57 = arith.constant 57 : index
    %225 = memref.load %arg1[%c57] : memref<61xf32, #tpu.memory_space<smem>>
    %226 = vector.broadcast %225 : f32 to vector<16x128xf32>
    %227 = arith.mulf %171, %226 : vector<16x128xf32>
    %228 = arith.addf %224, %227 : vector<16x128xf32>
    %c58 = arith.constant 58 : index
    %229 = memref.load %arg1[%c58] : memref<61xf32, #tpu.memory_space<smem>>
    %230 = vector.broadcast %229 : f32 to vector<16x128xf32>
    %231 = arith.mulf %194, %230 : vector<16x128xf32>
    %232 = arith.addf %228, %231 : vector<16x128xf32>
    %c59 = arith.constant 59 : index
    %233 = memref.load %arg1[%c59] : memref<61xf32, #tpu.memory_space<smem>>
    %234 = vector.broadcast %233 : f32 to vector<16x128xf32>
    %235 = arith.mulf %217, %234 : vector<16x128xf32>
    %236 = arith.addf %232, %235 : vector<16x128xf32>
    %c60 = arith.constant 60 : index
    %237 = memref.load %arg1[%c60] : memref<61xf32, #tpu.memory_space<smem>>
    %238 = vector.broadcast %237 : f32 to vector<16x128xf32>
    %239 = arith.addf %236, %238 : vector<16x128xf32>
    %240 = math.tanh %239 : vector<16x128xf32>
    %c0_12 = arith.constant 0 : index
    %c0_13 = arith.constant 0 : index
    %c0_14 = arith.constant 0 : index
    %241 = vector.load %arg3[%c0_12, %c0_13, %c0_14] : memref<1x16x128xf32, #tpu.memory_space<vmem>>, vector<1x16x128xf32>
    %242 = vector.shape_cast %241 : vector<1x16x128xf32> to vector<16x128xf32>
    %243 = vector.shape_cast %240 : vector<16x128xf32> to vector<1x16x128xf32>
    tpu.vector_store %arg3[%c0_12, %c0_13, %c0_14], %243 {strides = array<i32>} : memref<1x16x128xf32, #tpu.memory_space<vmem>>, vector<1x16x128xf32>,
    return
  }
  func.func @transform_0(%arg0: i32) -> i32 {
    %c0_i32 = arith.constant 0 : i32
    %c0_i32_0 = arith.constant 0 : i32
    return %c0_i32 : i32
  }
  func.func @transform_1(%arg0: i32) -> (i32, i32, i32) {
    %c0_i32 = arith.constant 0 : i32
    %c0_i32_0 = arith.constant 0 : i32
    %c0_i32_1 = arith.constant 0 : i32
    return %c0_i32, %arg0, %c0_i32_0 : i32, i32, i32
  }
  func.func @transform_2(%arg0: i32) -> (i32, i32, i32) {
    %c0_i32 = arith.constant 0 : i32
    %c0_i32_0 = arith.constant 0 : i32
    %c0_i32_1 = arith.constant 0 : i32
    return %c0_i32, %arg0, %c0_i32_0 : i32, i32, i32
  }
}

</mosaic_0001>

<bundles_post_ra>
// kernel: neural_network_forward.1
= control target key start
LH: loop header
LB: loop body
LE: loop exit
PB: predicated region body
PF: predicated region fallthrough
CT: control target
= control target key end

     0   :  { %7 = vsyncpa [#allocation3], 0  ;;  %s862_s0 = inlined_call_operand.vmem [shape: f32[61], index: 0, kind: input, shape index: {}]   ;;  %s863_s1 = inlined_call_operand.vmem [shape: f32[4,16,128], index: 1, kind: input, shape index: {}]   ;;  %s864_s2 = inlined_call_operand.vmem [shape: f32[1,16,128], index: 2, kind: output, shape index: {}]  }
   0x1   :  { %s14_s11 = sshll.u32 %s862_s0, 4  ;;  %s15_s11 = int_to_ptr.vmem [resolvable:$true] %s14_s11 }
   0x2   :  { %s497_s12 = scalar_lea.vmem %s15_s11, 16  ;;  %p502_p1 = scmp.lt.s32.totalorder %s15_s11, %s15_s11 }
   0x3   :  { %p498_p0 = scmp.ne.s32.totalorder %s15_s11, %s497_s12  ;;  %p503_p2 = scmp.lt.s32.totalorder %s497_s12, %s497_s12 }
   0x5   :  { %p504_p3 = por %p503_p2, %p502_p1 }
   0x7   :  { %p505_p4 = pnand %p504_p3, %p498_p0 }
   0x9   :  { %508 = shalt.err (!%p505_p4)
}
   0xa   :  { %s511_s13 = smov [#allocation2]  }
   0xb   :  { %17 = dma.vmem_to_smem %s15_s11, 16, %s511_s13, [#allocation3]  }
   0xc   :  { %509 = dma.done.wait [#allocation3], 16  }
   0xd   :  { %510 = vsyncadd [#allocation3], 4294967280 }
   0xe   :  { %23 = sfence }
   0xf   :  { %s35_s14 = sld [smem:[#allocation2]]  ;;  %v533_v0 = vld [vmem:[%s863_s1] sm:$0xff]  ;;  %v538_v1 = vld [vmem:[%s863_s1 + $0x8] sm:$0xff]  ;;  %v545_v2 = vld [vmem:[%s863_s1 + $0x10] sm:$0xff] }
  0x10   :  { %s392_s15 = sld [smem:[#allocation2 + $0x1]]  ;;  %v550_v3 = vld [vmem:[%s863_s1 + $0x18] sm:$0xff]  ;;  %v555_v4 = vld [vmem:[%s863_s1 + $0x20] sm:$0xff]  ;;  %v560_v5 = vld [vmem:[%s863_s1 + $0x28] sm:$0xff] }
  0x11   :  { %s393_s16 = sld [smem:[#allocation2 + $0x2]]  ;;  %v567_v7 = vld [vmem:[%s863_s1 + $0x30] sm:$0xff]  ;;  %v572_v8 = vld [vmem:[%s863_s1 + $0x38] sm:$0xff] }
  0x12   :  { %s394_s17 = sld [smem:[#allocation2 + $0x3]] }
  0x13   :  { %s540_s21 = sld [smem:[#allocation2 + $0x14]] }
  0x14   :  { %s396_s26 = sld [smem:[#allocation2 + $0x4]] }
  0x15   :  { %v36_v6 = vstv %s35_s14  ;;  %s562_s3 = sld [smem:[#allocation2 + $0x5]] }
  0x16   :  { %v37_v9 = vmul.f32 %v36_v6, %v533_v0  ;;  %v38_v10 = vmul.f32 %v36_v6, %v538_v1  ;;  %v40_v11 = vstv %s392_s15  ;;  %s576_s8 = sld [smem:[#allocation2 + $0x6]] }
  0x17   :  { %v41_v12 = vmul.f32 %v545_v2, %v40_v11  ;;  %v42_v13 = vmul.f32 %v550_v3, %v40_v11  ;;  %v46_v14 = vstv %s393_s16  ;;  %s580_s9 = sld [smem:[#allocation2 + $0x7]] }
  0x18   :  { %v47_v15 = vmul.f32 %v555_v4, %v46_v14  ;;  %v48_v16 = vmul.f32 %v560_v5, %v46_v14  ;;  %v52_v17 = vstv %s394_s17  ;;  %s584_s1 = sld [smem:[#allocation2 + $0x15]] }
  0x19   :  { %v43_v18 = vadd.f32 %v41_v12, %v37_v9  ;;  %v44_v19 = vadd.f32 %v42_v13, %v38_v10  ;;  %v53_v20 = vmul.f32 %v567_v7, %v52_v17  ;;  %v54_v21 = vmul.f32 %v572_v8, %v52_v17  ;;  %s588_s10 = sld [smem:[#allocation2 + $0x8]] }
  0x1a   :  { %v64_v22 = vstv %s396_s26  ;;  %s590_s11 = sld [smem:[#allocation2 + $0x9]]  ;;  %v58_v27 = vstv %s540_s21 }
  0x1b   :  { %v49_v23 = vadd.f32 %v47_v15, %v43_v18  ;;  %v50_v24 = vadd.f32 %v48_v16, %v44_v19  ;;  %v65_v25 = vmul.f32 %v64_v22, %v533_v0  ;;  %v66_v26 = vmul.f32 %v64_v22, %v538_v1  ;;  %s594_s12 = sld [smem:[#allocation2 + $0xa]] }
  0x1c   :  { %v68_v28 = vstv %s562_s3  ;;  %v74_v29 = vstv %s576_s8  ;;  %s599_s13 = sld [smem:[#allocation2 + $0xb]] }
  0x1d   :  { %v55_v30 = vadd.f32 %v53_v20, %v49_v23  ;;  %v56_v31 = vadd.f32 %v54_v21, %v50_v24  ;;  %v69_v32 = vmul.f32 %v545_v2, %v68_v28  ;;  %v70_v33 = vmul.f32 %v550_v3, %v68_v28  ;;  %s603_s14 = sld [smem:[#allocation2 + $0x16]] }
  0x1e   :  { %v75_v34 = vmul.f32 %v555_v4, %v74_v29  ;;  %v76_v35 = vmul.f32 %v560_v5, %v74_v29  ;;  %v80_v36 = vstv %s580_s9  ;;  %v86_v37 = vstv %s584_s1  ;;  %s609_s15 = sld [smem:[#allocation2 + $0xc]] }
  0x1f   :  { %v59_v38 = vadd.f32 %v58_v27, %v55_v30  ;;  %v60_v39 = vadd.f32 %v58_v27, %v56_v31  ;;  %v71_v40 = vadd.f32 %v69_v32, %v65_v25  ;;  %v72_v41 = vadd.f32 %v70_v33, %v66_v26  ;;  %s611_s16 = sld [smem:[#allocation2 + $0xd]] }
  0x20   :  { %v81_v42 = vmul.f32 %v567_v7, %v80_v36  ;;  %v82_v43 = vmul.f32 %v572_v8, %v80_v36  ;;  %v92_v44 = vstv %s588_s10  ;;  %v96_v45 = vstv %s590_s11  ;;  %s617_s17 = sld [smem:[#allocation2 + $0xe]] }
  0x21   :  { %453 = vtanh.f32 %v59_v38  ;;  %v77_v46 = vadd.f32 %v75_v34, %v71_v40  ;;  %v78_v47 = vadd.f32 %v76_v35, %v72_v41  ;;  %v93_v48 = vmul.f32 %v92_v44, %v533_v0  ;;  %s620_s18 = sld [smem:[#allocation2 + $0xf]] }
  0x22   :  { %455 = vtanh.f32 %v60_v39  ;;  %v94_v49 = vmul.f32 %v92_v44, %v538_v1  ;;  %v97_v50 = vmul.f32 %v545_v2, %v96_v45  ;;  %v98_v51 = vmul.f32 %v550_v3, %v96_v45  ;;  %s625_s19 = sld [smem:[#allocation2 + $0x17]] }
  0x23   :  { %v83_v52 = vadd.f32 %v81_v42, %v77_v46  ;;  %v84_v53 = vadd.f32 %v82_v43, %v78_v47  ;;  %v102_v54 = vstv %s594_s12  ;;  %v108_v55 = vstv %s599_s13  ;;  %s629_s0 = sld [smem:[#allocation2 + $0x10]] }
  0x24   :  { %v99_v56 = vadd.f32 %v97_v50, %v93_v48  ;;  %v100_v57 = vadd.f32 %v98_v51, %v94_v49  ;;  %v103_v58 = vmul.f32 %v555_v4, %v102_v54  ;;  %v104_v59 = vmul.f32 %v560_v5, %v102_v54  ;;  %s633_s20 = sld [smem:[#allocation2 + $0x11]] }
  0x25   :  { %v87_v60 = vadd.f32 %v86_v37, %v83_v52  ;;  %v88_v61 = vadd.f32 %v86_v37, %v84_v53  ;;  %v109_v62 = vmul.f32 %v567_v7, %v108_v55  ;;  %v110_v63 = vmul.f32 %v572_v8, %v108_v55  ;;  %s637_s21 = sld [smem:[#allocation2 + $0x12]] }
  0x26   :  { %v105_v6 = vadd.f32 %v103_v58, %v99_v56  ;;  %v106_v9 = vadd.f32 %v104_v59, %v100_v57  ;;  %v114_v10 = vstv %s603_s14  ;;  %v120_v11 = vstv %s609_s15  ;;  %s641_s22 = sld [smem:[#allocation2 + $0x13]] }
  0x27   :  { %457 = vtanh.f32 %v87_v60  ;;  %v121_v12 = vmul.f32 %v120_v11, %v533_v0  ;;  %v122_v13 = vmul.f32 %v120_v11, %v538_v1  ;;  %v124_v14 = vstv %s611_s16  ;;  %s646_s23 = sld [smem:[#allocation2 + $0x18]] }
  0x28   :  { %459 = vtanh.f32 %v88_v61  ;;  %v111_v15 = vadd.f32 %v109_v62, %v105_v6  ;;  %v112_v16 = vadd.f32 %v110_v63, %v106_v9  ;;  %v125_v17 = vmul.f32 %v545_v2, %v124_v14  ;;  %s649_s24 = sld [smem:[#allocation2 + $0x19]] }
  0x29   :  { %v126_v18 = vmul.f32 %v550_v3, %v124_v14  ;;  %v130_v19 = vstv %s617_s17  ;;  %v136_v20 = vstv %s620_s18  ;;  %v142_v21 = vstv %s625_s19  ;;  %s655_s25 = sld [smem:[#allocation2 + $0x1a]] }
  0x2a   :  { %v115_v22 = vadd.f32 %v114_v10, %v111_v15  ;;  %v116_v23 = vadd.f32 %v114_v10, %v112_v16  ;;  %v127_v24 = vadd.f32 %v125_v17, %v121_v12  ;;  %v131_v25 = vmul.f32 %v555_v4, %v130_v19  ;;  %s658_s26 = sld [smem:[#allocation2 + $0x1b]] }
  0x2b   :  { %v128_v26 = vadd.f32 %v126_v18, %v122_v13  ;;  %v132_v27 = vmul.f32 %v560_v5, %v130_v19  ;;  %v137_v28 = vmul.f32 %v567_v7, %v136_v20  ;;  %v138_v29 = vmul.f32 %v572_v8, %v136_v20  ;;  %s663_s27 = sld [smem:[#allocation2 + $0x1c]] }
  0x2c   :  { %461 = vtanh.f32 %v115_v22  ;;  %v133_v30 = vadd.f32 %v131_v25, %v127_v24  ;;  %v148_v31 = vstv %s629_s0  ;;  %v152_v32 = vstv %s633_s20  ;;  %s667_s28 = sld [smem:[#allocation2 + $0x1d]] }
  0x2d   :  { %463 = vtanh.f32 %v116_v23  ;;  %v134_v33 = vadd.f32 %v132_v27, %v128_v26  ;;  %v149_v34 = vmul.f32 %v148_v31, %v533_v0  ;;  %v150_v35 = vmul.f32 %v148_v31, %v538_v1  ;;  %s671_s29 = sld [smem:[#allocation2 + $0x32]] }
  0x2e   :  { %v673_v36 = vpop.eup %453  ;;  %v139_v37 = vadd.f32 %v137_v28, %v133_v30  ;;  %v153_v38 = vmul.f32 %v545_v2, %v152_v32  ;;  %v154_v39 = vmul.f32 %v550_v3, %v152_v32  ;;  %v158_v40 = vstv %s637_s21  ;;  %s678_s30 = sld [smem:[#allocation2 + $0x1e]] }
  0x2f   :  { %v680_v41 = vpop.eup %455  ;;  %v140_v42 = vadd.f32 %v138_v29, %v134_v33  ;;  %v159_v0 = vmul.f32 %v555_v4, %v158_v40  ;;  %v160_v1 = vmul.f32 %v560_v5, %v158_v40  ;;  %v164_v43 = vstv %s641_s22  ;;  %s685_s3 = sld [smem:[#allocation2 + $0x1f]] }
  0x30   :  { %v143_v44 = vadd.f32 %v142_v21, %v139_v37  ;;  %v155_v45 = vadd.f32 %v153_v38, %v149_v34  ;;  %v156_v2 = vadd.f32 %v154_v39, %v150_v35  ;;  %v165_v3 = vmul.f32 %v567_v7, %v164_v43  ;;  %s688_s4 = sld [smem:[#allocation2 + $0x20]] }
  0x31   :  { %v144_v46 = vadd.f32 %v142_v21, %v140_v42  ;;  %v166_v47 = vmul.f32 %v572_v8, %v164_v43  ;;  %v176_v48 = vstv %s649_s24  ;;  %s692_s5 = sld [smem:[#allocation2 + $0x21]]  ;;  %v170_v49 = vstv %s646_s23 }
  0x32   :  { %465 = vtanh.f32 %v143_v44  ;;  %v161_v4 = vadd.f32 %v159_v0, %v155_v45  ;;  %v162_v5 = vadd.f32 %v160_v1, %v156_v2  ;;  %s695_s6 = sld [smem:[#allocation2 + $0x22]]  ;;  %v177_v7 = vmul.f32 %v673_v36, %v176_v48 }
  0x33   :  { %467 = vtanh.f32 %v144_v46  ;;  %v178_v50 = vmul.f32 %v680_v41, %v176_v48  ;;  %v180_v8 = vstv %s655_s25  ;;  %s700_s7 = sld [smem:[#allocation2 + $0x33]]  ;;  %v186_v54 = vstv %s658_s26 }
  0x34   :  { %v702_v51 = vpop.eup %457  ;;  %v167_v52 = vadd.f32 %v165_v3, %v161_v4  ;;  %v168_v53 = vadd.f32 %v166_v47, %v162_v5  ;;  %v192_v55 = vstv %s663_s27  ;;  %s706_s8 = sld [smem:[#allocation2 + $0x23]]  ;;  %v198_v58 = vstv %s667_s28 }
  0x35   :  { %v708_v56 = vpop.eup %459  ;;  %v181_v57 = vmul.f32 %v702_v51, %v180_v8  ;;  %v210_v59 = vstv %s678_s30  ;;  %v214_v60 = vstv %s685_s3  ;;  %s714_s9 = sld [smem:[#allocation2 + $0x24]]  ;;  %v204_v9 = vstv %s671_s29 }
  0x36   :  { %v171_v61 = vadd.f32 %v170_v49, %v167_v52  ;;  %v172_v62 = vadd.f32 %v170_v49, %v168_v53  ;;  %v182_v63 = vmul.f32 %v708_v56, %v180_v8  ;;  %v211_v6 = vmul.f32 %v673_v36, %v210_v59  ;;  %s718_s1 = sld [smem:[#allocation2 + $0x25]] }
  0x37   :  { %v212_v10 = vmul.f32 %v680_v41, %v210_v59  ;;  %v215_v11 = vmul.f32 %v702_v51, %v214_v60  ;;  %v216_v12 = vmul.f32 %v708_v56, %v214_v60  ;;  %s724_s10 = sld [smem:[#allocation2 + $0x26]]  ;;  %v183_v13 = vadd.f32 %v181_v57, %v177_v7 }
  0x38   :  { %469 = vtanh.f32 %v171_v61  ;;  %v184_v14 = vadd.f32 %v182_v63, %v178_v50  ;;  %v220_v15 = vstv %s688_s4  ;;  %s727_s11 = sld [smem:[#allocation2 + $0x27]]  ;;  %v226_v19 = vstv %s692_s5 }
  0x39   :  { %v729_v16 = vpop.eup %461  ;;  %471 = vtanh.f32 %v172_v62  ;;  %v217_v17 = vadd.f32 %v215_v11, %v211_v6  ;;  %v218_v18 = vadd.f32 %v216_v12, %v212_v10  ;;  %s732_s12 = sld [smem:[#allocation2 + $0x34]]  ;;  %v232_v23 = vstv %s695_s6 }
  0x3a   :  { %v734_v20 = vpop.eup %463  ;;  %v187_v21 = vmul.f32 %v729_v16, %v186_v54  ;;  %v221_v22 = vmul.f32 %v729_v16, %v220_v15  ;;  %v244_v24 = vstv %s706_s8  ;;  %s740_s13 = sld [smem:[#allocation2 + $0x28]]  ;;  %v238_v30 = vstv %s700_s7 }
  0x3b   :  { %v188_v25 = vmul.f32 %v734_v20, %v186_v54  ;;  %v222_v26 = vmul.f32 %v734_v20, %v220_v15  ;;  %v245_v27 = vmul.f32 %v673_v36, %v244_v24  ;;  %v246_v28 = vmul.f32 %v680_v41, %v244_v24  ;;  %s746_s14 = sld [smem:[#allocation2 + $0x29]] }
  0x3c   :  { %v189_v29 = vadd.f32 %v187_v21, %v183_v13  ;;  %v248_v31 = vstv %s714_s9  ;;  %v254_v32 = vstv %s718_s1  ;;  %s751_s15 = sld [smem:[#allocation2 + $0x2a]]  ;;  %v223_v34 = vadd.f32 %v221_v22, %v217_v17 }
  0x3d   :  { %v190_v33 = vadd.f32 %v188_v25, %v184_v14  ;;  %v249_v35 = vmul.f32 %v702_v51, %v248_v31  ;;  %v250_v37 = vmul.f32 %v708_v56, %v248_v31  ;;  %s755_s16 = sld [smem:[#allocation2 + $0x2b]]  ;;  %v224_v38 = vadd.f32 %v222_v26, %v218_v18 }
  0x3e   :  { %v255_v39 = vmul.f32 %v729_v16, %v254_v32  ;;  %v256_v40 = vmul.f32 %v734_v20, %v254_v32  ;;  %v260_v42 = vstv %s724_s10  ;;  %v266_v44 = vstv %s727_s11  ;;  %s778_s17 = sld [smem:[#allocation2 + $0x2c]] }
  0x3f   :  { %v760_v0 = vpop.eup %465  ;;  %v251_v1 = vadd.f32 %v249_v35, %v245_v27  ;;  %v252_v43 = vadd.f32 %v250_v37, %v246_v28  ;;  %v272_v45 = vstv %s732_s12  ;;  %s781_s18 = sld [smem:[#allocation2 + $0x35]] }
  0x40   :  { %v764_v2 = vpop.eup %467  ;;  %v193_v3 = vmul.f32 %v760_v0, %v192_v55  ;;  %v227_v46 = vmul.f32 %v760_v0, %v226_v19  ;;  %v261_v47 = vmul.f32 %v760_v0, %v260_v42  ;;  %v278_v48 = vstv %s740_s13  ;;  %s786_s19 = sld [smem:[#allocation2 + $0x2d]] }
  0x41   :  { %v194_v4 = vmul.f32 %v764_v2, %v192_v55  ;;  %v228_v5 = vmul.f32 %v764_v2, %v226_v19  ;;  %v257_v49 = vadd.f32 %v255_v39, %v251_v1  ;;  %v258_v7 = vadd.f32 %v256_v40, %v252_v43  ;;  %s794_s0 = sld [smem:[#allocation2 + $0x2e]] }
  0x42   :  { %v195_v50 = vadd.f32 %v193_v3, %v189_v29  ;;  %v229_v8 = vadd.f32 %v227_v46, %v223_v34  ;;  %v262_v52 = vmul.f32 %v764_v2, %v260_v42  ;;  %v279_v53 = vmul.f32 %v673_v36, %v278_v48  ;;  %s806_s20 = sld [smem:[#allocation2 + $0x2f]] }
  0x43   :  { %v196_v54 = vadd.f32 %v194_v4, %v190_v33  ;;  %v230_v57 = vadd.f32 %v228_v5, %v224_v38  ;;  %v263_v59 = vadd.f32 %v261_v47, %v257_v49  ;;  %v280_v55 = vmul.f32 %v680_v41, %v278_v48  ;;  %s819_s21 = sld [smem:[#allocation2 + $0x30]] }
  0x44   :  { %v264_v60 = vadd.f32 %v262_v52, %v258_v7  ;;  %v282_v61 = vstv %s746_s14  ;;  %v288_v62 = vstv %s751_s15  ;;  %v294_v63 = vstv %s755_s16  ;;  %s826_s22 = sld [smem:[#allocation2 + $0x31]] }
  0x45   :  { %v788_v6 = vpop.eup %469  ;;  %v283_v10 = vmul.f32 %v702_v51, %v282_v61  ;;  %v284_v11 = vmul.f32 %v708_v56, %v282_v61  ;;  %v289_v12 = vmul.f32 %v729_v16, %v288_v62  ;;  %v290_v13 = vmul.f32 %v734_v20, %v288_v62  ;;  %s836_s23 = sld [smem:[#allocation2 + $0x36]] }
  0x46   :  { %v796_v14 = vpop.eup %471  ;;  %v199_v15 = vmul.f32 %v788_v6, %v198_v58  ;;  %v233_v17 = vmul.f32 %v788_v6, %v232_v23  ;;  %v267_v18 = vmul.f32 %v788_v6, %v266_v44  ;;  %v295_v19 = vmul.f32 %v760_v0, %v294_v63  ;;  %s841_s24 = sld [smem:[#allocation2 + $0x37]] }
  0x47   :  { %v200_v21 = vmul.f32 %v796_v14, %v198_v58  ;;  %v234_v22 = vmul.f32 %v796_v14, %v232_v23  ;;  %v268_v24 = vmul.f32 %v796_v14, %v266_v44  ;;  %v285_v25 = vadd.f32 %v283_v10, %v279_v53  ;;  %s844_s25 = sld [smem:[#allocation2 + $0x38]] }
  0x48   :  { %v201_v26 = vadd.f32 %v199_v15, %v195_v50  ;;  %v235_v27 = vadd.f32 %v233_v17, %v229_v8  ;;  %v269_v28 = vadd.f32 %v267_v18, %v263_v59  ;;  %v286_v29 = vadd.f32 %v284_v11, %v280_v55  ;;  %s448_s26 = sld [smem:[#allocation2 + $0x39]] }
  0x49   :  { %v202_v31 = vadd.f32 %v200_v21, %v196_v54  ;;  %v236_v32 = vadd.f32 %v234_v22, %v230_v57  ;;  %v270_v33 = vadd.f32 %v268_v24, %v264_v60  ;;  %v291_v34 = vadd.f32 %v289_v12, %v285_v25  ;;  %s449_s27 = sld [smem:[#allocation2 + $0x3a]] }
  0x4a   :  { %v205_v58 = vadd.f32 %v204_v9, %v201_v26  ;;  %v239_v35 = vadd.f32 %v238_v30, %v235_v27  ;;  %v273_v23 = vadd.f32 %v272_v45, %v269_v28  ;;  %v292_v37 = vadd.f32 %v290_v13, %v286_v29  ;;  %s450_s28 = sld [smem:[#allocation2 + $0x3b]] }
  0x4b   :  { %v206_v38 = vadd.f32 %v204_v9, %v202_v31  ;;  %v240_v39 = vadd.f32 %v238_v30, %v236_v32  ;;  %v274_v40 = vadd.f32 %v272_v45, %v270_v33  ;;  %v296_v42 = vmul.f32 %v764_v2, %v294_v63  ;;  %s451_s29 = sld [smem:[#allocation2 + $0x3c]] }
  0x4c   :  { %473 = vtanh.f32 %v205_v58  ;;  %v297_v1 = vadd.f32 %v295_v19, %v291_v34  ;;  %v300_v43 = vstv %s778_s17  ;;  %v306_v44 = vstv %s781_s18 }
  0x4d   :  { %475 = vtanh.f32 %v206_v38  ;;  %v298_v3 = vadd.f32 %v296_v42, %v292_v37  ;;  %v301_v46 = vmul.f32 %v788_v6, %v300_v43  ;;  %v302_v47 = vmul.f32 %v796_v14, %v300_v43 }
  0x4e   :  { %477 = vtanh.f32 %v239_v35  ;;  %v312_v9 = vstv %s786_s19  ;;  %v316_v48 = vstv %s794_s0  ;;  %v322_v4 = vstv %s806_s20 }
  0x4f   :  { %479 = vtanh.f32 %v240_v39  ;;  %v303_v30 = vadd.f32 %v301_v46, %v297_v1  ;;  %v304_v45 = vadd.f32 %v302_v47, %v298_v3  ;;  %v313_v5 = vmul.f32 %v673_v36, %v312_v9 }
  0x50   :  { %481 = vtanh.f32 %v273_v23  ;;  %v314_v49 = vmul.f32 %v680_v41, %v312_v9  ;;  %v317_v7 = vmul.f32 %v702_v51, %v316_v48  ;;  %v318_v50 = vmul.f32 %v708_v56, %v316_v48 }
  0x51   :  { %483 = vtanh.f32 %v274_v40  ;;  %v307_v8 = vadd.f32 %v306_v44, %v303_v30  ;;  %v308_v52 = vadd.f32 %v306_v44, %v304_v45  ;;  %v323_v53 = vmul.f32 %v729_v16, %v322_v4 }
  0x52   :  { %v319_v36 = vadd.f32 %v317_v7, %v313_v5  ;;  %v320_v54 = vadd.f32 %v318_v50, %v314_v49  ;;  %v324_v57 = vmul.f32 %v734_v20, %v322_v4  ;;  %v328_v59 = vstv %s819_s21 }
  0x53   :  { %v329_v41 = vmul.f32 %v760_v0, %v328_v59  ;;  %v330_v51 = vmul.f32 %v764_v2, %v328_v59  ;;  %v334_v56 = vstv %s826_s22  ;;  %485 = vtanh.f32 %v307_v8 }
  0x54   :  { %v325_v55 = vadd.f32 %v323_v53, %v319_v36  ;;  %v326_v60 = vadd.f32 %v324_v57, %v320_v54  ;;  %v335_v16 = vmul.f32 %v788_v6, %v334_v56  ;;  %487 = vtanh.f32 %v308_v52 }
  0x55   :  { %v336_v61 = vmul.f32 %v796_v14, %v334_v56  ;;  %v340_v20 = vstv %s836_s23  ;;  %v346_v12 = vstv %s841_s24  ;;  %v350_v13 = vstv %s844_s25 }
  0x56   :  { %v331_v62 = vadd.f32 %v329_v41, %v325_v55  ;;  %v332_v63 = vadd.f32 %v330_v51, %v326_v60  ;;  %v356_v25 = vstv %s448_s26  ;;  %v362_v33 = vstv %s449_s27 }
  0x57   :  { %v368_v38 = vstv %s450_s28  ;;  %v374_v3 = vstv %s451_s29 }
  0x58   :  { %v337_v10 = vadd.f32 %v335_v16, %v331_v62  ;;  %v338_v11 = vadd.f32 %v336_v61, %v332_v63 }
  0x59   :  { %v474_v0 = vpop.eup %473 }
  0x5a   :  { %v476_v2 = vpop.eup %475  ;;  %v341_v15 = vadd.f32 %v340_v20, %v337_v10  ;;  %v342_v17 = vadd.f32 %v340_v20, %v338_v11  ;;  %v347_v6 = vmul.f32 %v474_v0, %v346_v12 }
  0x5b   :  { %v478_v18 = vpop.eup %477  ;;  %v348_v14 = vmul.f32 %v476_v2, %v346_v12 }
  0x5c   :  { %v480_v19 = vpop.eup %479  ;;  %489 = vtanh.f32 %v341_v15  ;;  %v351_v21 = vmul.f32 %v478_v18, %v350_v13 }
  0x5d   :  { %v482_v22 = vpop.eup %481  ;;  %491 = vtanh.f32 %v342_v17  ;;  %v352_v24 = vmul.f32 %v480_v19, %v350_v13 }
  0x5e   :  { %v484_v26 = vpop.eup %483  ;;  %v353_v27 = vadd.f32 %v351_v21, %v347_v6  ;;  %v357_v28 = vmul.f32 %v482_v22, %v356_v25 }
  0x5f   :  { %v354_v31 = vadd.f32 %v352_v24, %v348_v14  ;;  %v358_v32 = vmul.f32 %v484_v26, %v356_v25 }
  0x60   :  { %v486_v29 = vpop.eup %485  ;;  %v359_v58 = vadd.f32 %v357_v28, %v353_v27 }
  0x61   :  { %v488_v34 = vpop.eup %487  ;;  %v363_v35 = vmul.f32 %v486_v29, %v362_v33  ;;  %v360_v23 = vadd.f32 %v358_v32, %v354_v31 }
  0x62   :  { %v364_v37 = vmul.f32 %v488_v34, %v362_v33 }
  0x63   :  { %v365_v39 = vadd.f32 %v363_v35, %v359_v58 }
  0x64   :  { %v366_v42 = vadd.f32 %v364_v37, %v360_v23 }
  0x69   :  { %v490_v40 = vpop.eup %489 }
  0x6a   :  { %v492_v1 = vpop.eup %491  ;;  %v369_v43 = vmul.f32 %v490_v40, %v368_v38 }
  0x6b   :  { %v370_v44 = vmul.f32 %v492_v1, %v368_v38 }
  0x6c   :  { %v371_v46 = vadd.f32 %v369_v43, %v365_v39 }
  0x6d   :  { %v372_v47 = vadd.f32 %v370_v44, %v366_v42 }
  0x6e   :  { %v375_v9 = vadd.f32 %v374_v3, %v371_v46 }
  0x6f   :  { %v376_v48 = vadd.f32 %v374_v3, %v372_v47 }
  0x70   :  { %493 = vtanh.f32 %v375_v9 }
  0x71   :  { %495 = vtanh.f32 %v376_v48 }
  0x7d   :  { %v494_v4 = vpop.eup %493 }
  0x7e   :  { %v496_v30 = vpop.eup %495  ;;  %379 = vst [vmem:[%s864_s2] sm:$0xff] %v494_v4 }
  0x7f   :  { %380 = vst [vmem:[%s864_s2 + $0x8] sm:$0xff] %v496_v30 }
  0x80   :  { %385 = vsyncpa [#allocation3], 1 }

</bundles_post_ra>
